<compile_context>
chip_gen: v7x
topology: tpu7x:2x2x1
jax: 0.10.0
libtpu: 0.0.40
codegen_flags: <defaults>
</compile_context>

<pallas_src>
import jax
import jax.numpy as jnp
from jax.experimental import pallas as pl
from jax.experimental.pallas import tpu as pltpu


_LANE = 128
_MAX_BATCH_TILE = 128
# Target total double-buffered pipeline footprint (padded accounting below).
_PIPELINE_BUDGET_BYTES = 28 * 1024 * 1024
# Safe on all generations: < 64 MiB/TC (v7x), << 128 MiB (v5e/v6e).
_VMEM_LIMIT_BYTES = 48 * 1024 * 1024
# Below this total size, plain XLA broadcast-add is strictly faster.
_MIN_PALLAS_BYTES = 256 * 1024


def _round_up(n: int, m: int) -> int:
    return ((n + m - 1) // m) * m


def _sublane_multiple(dtype) -> int:
    # Physical sublane packing of a VMEM tile: f32 -> 8 rows, bf16 -> 16, int8 -> 32.
    return max(8, 32 // jnp.dtype(dtype).itemsize)


def _add_pos_kernel(x_ref, pos_ref, o_ref):
    # x_ref / o_ref: (tB, tF) tile; pos_ref: (1, tF) tile broadcast over batch rows.
    o_ref[...] = x_ref[...] + pos_ref[...]


def learned_positional_encoding(x: jax.Array, pos_emb: jax.Array,
                                *, use_pallas: bool | None = None,
                                max_flat_tile: int | None = None) -> jax.Array:
    """Forward of LearnedPositionalEncoding: x + pos_emb (broadcast on batch).

    x:        (B, S, E)
    pos_emb:  (1, S, E)
    use_pallas:    None -> size-based heuristic; True/False forces the path.
    max_flat_tile: optional cap on the flattened-axis tile (testing/tuning hook).
    """
    B, S, E = x.shape
    assert pos_emb.shape == (1, S, E), pos_emb.shape

    # Match PyTorch type promotion of `x + parameter` (e.g. bf16 x + f32 param -> f32).
    out_dtype = jnp.result_type(x.dtype, pos_emb.dtype)
    itemsize = jnp.dtype(out_dtype).itemsize

    if use_pallas is None:
        use_pallas = B * S * E * itemsize >= _MIN_PALLAS_BYTES
    if not use_pallas:
        # Tiny-input fast path: fused XLA broadcast-add is already at roofline.
        return x.astype(out_dtype) + pos_emb.astype(out_dtype)

    # Layout plumbing only: flatten (S, E) -> F so the kernel sees a lane-dense
    # last axis regardless of E.
    F = S * E
    x2 = x.astype(out_dtype).reshape(B, F)
    p2 = pos_emb.astype(out_dtype).reshape(1, F)

    sub = _sublane_multiple(out_dtype)

    # Batch tile: whole batch when small; otherwise a sublane-aligned chunk so
    # no VMEM is wasted on padding rows.
    if B >= sub:
        tB = (min(B, _MAX_BATCH_TILE) // sub) * sub
    else:
        tB = B
    padded_tB = _round_up(tB, sub)

    # Lane tile: largest multiple of 128 that keeps the double-buffered,
    # sublane-padded pipeline inside the budget:
    #   2 bufs * (x + out) * padded_tB rows  +  2 bufs * pos (padded to `sub` rows)
    denom = (4 * padded_tB + 2 * sub) * itemsize
    tF = _PIPELINE_BUDGET_BYTES // denom
    tF = max(_LANE, (tF // _LANE) * _LANE)
    if max_flat_tile is not None:
        tF = min(tF, max(_LANE, (max_flat_tile // _LANE) * _LANE))
    if tF >= F:
        # Whole F axis fits in one budgeted block: use the full dim (satisfies
        # the (8,128) rule via the "equals full array dim" exemption, no masking).
        tF = F

    # Batch-tile axis innermost so pos_emb's block index (0, f) is unchanged
    # between consecutive steps -> Pallas skips the redundant pos DMA.  The
    # leading (F) axis is "parallel" so v7x's two TensorCores split it.
    grid = (pl.cdiv(F, tF), pl.cdiv(B, tB))

    out2 = pl.pallas_call(
        _add_pos_kernel,
        out_shape=jax.ShapeDtypeStruct((B, F), out_dtype),
        grid=grid,
        in_specs=[
            pl.BlockSpec((tB, tF), lambda f, b: (b, f)),
            pl.BlockSpec((1, tF), lambda f, b: (0, f)),
        ],
        out_specs=pl.BlockSpec((tB, tF), lambda f, b: (b, f)),
        compiler_params=pltpu.CompilerParams(
            dimension_semantics=("parallel", "parallel"),
            vmem_limit_bytes=_VMEM_LIMIT_BYTES,
        ),
    )(x2, p2)

    return out2.reshape(B, S, E)


if __name__ == "__main__":
    key = jax.random.PRNGKey(0)

    def _check(B, S, E, dtype, **kwargs):
        kx, kp = jax.random.split(jax.random.fold_in(key, B * 100003 + S * 131 + E))
        x = jax.random.normal(kx, (B, S, E), dtype=jnp.float32).astype(dtype)
        # nn.Parameter is zeros in the module; use small random values so the
        # add is actually exercised (synthetic weights, not a checkpoint).
        pos = (jax.random.normal(kp, (1, S, E), dtype=jnp.float32) * 0.02).astype(dtype)
        out = jax.block_until_ready(learned_positional_encoding(x, pos, **kwargs))
        ref = x + pos
        assert out.shape == ref.shape, (out.shape, ref.shape)
        assert out.dtype == ref.dtype, (out.dtype, ref.dtype)
        assert jnp.allclose(out.astype(jnp.float32), ref.astype(jnp.float32),
                            atol=1e-5, rtol=1e-5)

    # Primary small shape consistent with the module (batch=2, seq=8, embed=32).
    # Force the Pallas path so the kernel itself is exercised (the size-based
    # fast path would otherwise route this 2 KB tensor through plain XLA).
    _check(2, 8, 32, jnp.float32, use_pallas=True)
    # F = S*E = 4800 is NOT a multiple of 128; capped tile exercises the
    # cdiv grid + masked final partial F block.
    _check(4, 50, 96, jnp.float32, use_pallas=True, max_flat_tile=512)
    # Batch >= sublane count, bf16, multi-block F.
    _check(16, 24, 64, jnp.bfloat16, use_pallas=True, max_flat_tile=256)
    # Tiny-input fast path (plain XLA).
    _check(2, 8, 32, jnp.float32)

    print("KERNEL_OK")
</pallas_src>

<mosaic_0001>
module attributes {stable_mosaic.version = 11 : i64} {
  func.func @_add_pos_kernel(%arg0: i32, %arg1: i32, %arg2: memref<2x256xf32, #tpu.memory_space<vmem>>, %arg3: memref<1x256xf32, #tpu.memory_space<vmem>>, %arg4: memref<2x256xf32, #tpu.memory_space<vmem>>) attributes {dimension_semantics = [#tpu.dimension_semantics<parallel>, #tpu.dimension_semantics<parallel>], iteration_bounds = array<i64: 1, 1>, scalar_prefetch = 0 : i64, scratch_operands = 0 : i64, tpu.core_type = #tpu.core_type<tc>, window_params = [{transform_indices = @transform_0, window_bounds = array<i64: 2, 256>}, {transform_indices = @transform_1, window_bounds = array<i64: 1, 256>}, {transform_indices = @transform_2, window_bounds = array<i64: 2, 256>}]} {
    %c0 = arith.constant 0 : index
    %c0_0 = arith.constant 0 : index
    %0 = vector.load %arg2[%c0, %c0_0] : memref<2x256xf32, #tpu.memory_space<vmem>>, vector<2x256xf32>
    %c0_1 = arith.constant 0 : index
    %c0_2 = arith.constant 0 : index
    %1 = vector.load %arg3[%c0_1, %c0_2] : memref<1x256xf32, #tpu.memory_space<vmem>>, vector<1x256xf32>
    %2 = vector.broadcast %1 : vector<1x256xf32> to vector<2x256xf32>
    %3 = arith.addf %0, %2 : vector<2x256xf32>
    %c0_3 = arith.constant 0 : index
    %c0_4 = arith.constant 0 : index
    %4 = vector.load %arg4[%c0_3, %c0_4] : memref<2x256xf32, #tpu.memory_space<vmem>>, vector<2x256xf32>
    tpu.vector_store %arg4[%c0_3, %c0_4], %3 {strides = array<i32>} : memref<2x256xf32, #tpu.memory_space<vmem>>, vector<2x256xf32>,
    return
  }
  func.func @transform_0(%arg0: i32, %arg1: i32) -> (i32, i32) {
    %c0_i32 = arith.constant 0 : i32
    return %arg1, %arg0 : i32, i32
  }
  func.func @transform_1(%arg0: i32, %arg1: i32) -> (i32, i32) {
    %c0_i32 = arith.constant 0 : i32
    %c0_i32_0 = arith.constant 0 : i32
    return %c0_i32, %arg0 : i32, i32
  }
  func.func @transform_2(%arg0: i32, %arg1: i32) -> (i32, i32) {
    %c0_i32 = arith.constant 0 : i32
    return %arg1, %arg0 : i32, i32
  }
}

</mosaic_0001>

<bundles_post_ra>
// kernel: tpu_custom_call.1
= control target key start
LH: loop header
LB: loop body
LE: loop exit
PB: predicated region body
PF: predicated region fallthrough
CT: control target
= control target key end

     0   :  { %7 = vsyncpa [#allocation3], 0  ;;  %s157_s0 = inlined_call_operand.hbm [shape: f32[2,256], index: 0, kind: input, shape index: {}]   ;;  %s158_s1 = inlined_call_operand.vmem [shape: f32[1,256], index: 1, kind: input, shape index: {}]   ;;  %s159_s2 = inlined_call_operand.hbm [shape: f32[2,256], index: 2, kind: output, shape index: {}]  }
   0x1   :  { %8 = vsyncpa [#allocation4], 0  ;;  %s112_s9 = smov [#allocation2]   ;;  %s64_s13 = scalar_lea.hbm %s157_s0, 64 }
   0x2   :  { %s15_s10 = sshll.u32 %s112_s9, 4  ;;  %p65_p0 = scmp.ne.s32.totalorder %s157_s0, %s64_s13  ;;  %s16_s10 = int_to_ptr.vmem [resolvable:$true] %s15_s10 }
   0x3   :  { %p68_p1 = scmp.lt.u32.totalorder %s64_s13, %s157_s0 }
   0x5   :  { %p70_p2 = pnand %p68_p1, %p65_p0 }
   0x7   :  { %73 = shalt.err (!%p70_p2)
}
   0x8   :  { %s74_s18 = scalar_lea.vmem %s16_s10, 64  ;;  %p79_p4 = scmp.lt.s32.totalorder %s16_s10, %s16_s10 }
   0x9   :  { %p75_p3 = scmp.ne.s32.totalorder %s16_s10, %s74_s18  ;;  %p80_p5 = scmp.lt.s32.totalorder %s74_s18, %s74_s18 }
   0xb   :  { %p81_p6 = por %p80_p5, %p79_p4 }
   0xd   :  { %p82_p7 = pnand %p81_p6, %p75_p3 }
   0xf   :  { %85 = shalt.err (!%p82_p7)
}
  0x10   :  { %18 = dma.hbm_to_vmem [thread:$0]  %s157_s0, 64, %s16_s10, [#allocation3]  }
  0x11   :  { %108 = dma.done.wait [#allocation3], 64  }
  0x12   :  { %109 = vsyncadd [#allocation3], 4294967232  ;;  %v27_v0 = vlaneseq  ;;  %v113_v1 = vmov 1983009808   ;;  %v25_v7 = vld [vmem:[%s158_s1] sm:$0x3] }
  0x13   :  { %v37_v2 = vunpack.c.l.s4 %v113_v1  ;;  %v24_v12 = vld [vmem:[#allocation2] sm:$0xf]  ;;  %s114_s23 = smov [#allocation5]  }
  0x14   :  { %v28_v3 = vshrl.u32 %v27_v0, 7  ;;  %s52_s0 = sshll.u32 %s114_s23, 4  ;;  %s53_s0 = int_to_ptr.vmem [resolvable:$true] %s52_s0 }
  0x15   :  { %v38_v6 = vunpack.c.0.s8 %v37_v2  ;;  %s86_s24 = scalar_lea.vmem %s53_s0, 64  ;;  %p91_p9 = scmp.lt.s32.totalorder %s53_s0, %s53_s0 }
  0x16   :  { %v29_v4 = vsub.s32 0, %v28_v3  ;;  %v33_v5 = vsub.s32 1, %v28_v3  ;;  %p87_p8 = scmp.ne.s32.totalorder %s53_s0, %s86_s24  ;;  %p92_p10 = scmp.lt.s32.totalorder %s86_s24, %s86_s24 }
  0x17   :  { %v41_v10 = vsub.s32 %v38_v6, %v28_v3 }
  0x18   :  { %v30_v8 = vrot.slane %v25_v7, %v29_v4  ;;  %v34_v9 = vrot.slane %v25_v7, %v33_v5  ;;  %p93_p11 = por %p92_p10, %p91_p9 }
  0x1a   :  { %v35_v11 = vcombine.low %v30_v8, %v34_v9  ;;  %p94_p12 = pnand %p93_p11, %p87_p8 }
  0x1c   :  { %v42_v13 = vrot.slane %v35_v11, %v41_v10 }
  0x1e   :  { %v44_v14 = vadd.f32 %v42_v13, %v24_v12 }
  0x20   :  { %45 = vst [vmem:[#allocation5] sm:$0xf] %v44_v14 }
  0x21   :  { %97 = shalt.err (!%p94_p12)
}
  0x22   :  { %s98_s26 = scalar_lea.hbm %s159_s2, 64 }
  0x23   :  { %p99_p13 = scmp.ne.s32.totalorder %s159_s2, %s98_s26  ;;  %p102_p0 = scmp.lt.u32.totalorder %s98_s26, %s159_s2 }
  0x25   :  { %p104_p1 = pnand %p102_p0, %p99_p13 }
  0x27   :  { %107 = shalt.err (!%p104_p1)
}
  0x28   :  { %55 = dma.vmem_to_hbm [thread:$0]  %s53_s0, 64, %s159_s2, [#allocation4]  }
  0x29   :  { %110 = dma.done.wait [#allocation4], 64  }
  0x2a   :  { %111 = vsyncadd [#allocation4], 4294967232 }
  0x2b   :  { %59 = vsyncpa [#allocation3], 1 }
  0x2c   :  { %60 = vsyncpa [#allocation4], 1 }

</bundles_post_ra>
